<compile_context>
chip_gen: v7x
topology: tpu7x:2x2x1
jax: 0.10.0
libtpu: 0.0.40
codegen_flags: <defaults>
</compile_context>

<pallas_src>
import jax
import jax.numpy as jnp
from jax import lax
from jax.experimental import pallas as pl
from jax.experimental.pallas import tpu as pltpu


def mlp_kernel(x_ref, w1_ref, b1_ref, w2_ref, b2_ref, w3_ref, b3_ref, o_ref):
    # x arrives as the raw f32 HBM stream; cast to bf16 in-kernel (VPU cast is
    # free under the memory bound), avoiding a separate XLA pass over x.
    x = x_ref[...].astype(jnp.bfloat16)                          # (TB, D)
    # fc1 + ReLU (f32 accumulation / activation)
    h1 = jnp.dot(x, w1_ref[...], preferred_element_type=jnp.float32) + b1_ref[...]
    h1 = jnp.maximum(h1, 0.0)                                    # (TB, 64) f32
    # fc2 + ReLU
    h2 = jnp.dot(h1.astype(jnp.bfloat16), w2_ref[...],
                 preferred_element_type=jnp.float32) + b2_ref[...]
    h2 = jnp.maximum(h2, 0.0)                                    # (TB, 32) f32
    # fc3 computed transposed: (1, 32) contracted with (TB, 32) on the feature
    # axis -> (1, TB), so the store below is a lane-dense unmasked vst.
    logits_t = lax.dot_general(
        w3_ref[...], h2.astype(jnp.bfloat16),
        dimension_numbers=(((1,), (1,)), ((), ())),
        preferred_element_type=jnp.float32,
    ) + b3_ref[0, 0]                                             # (1, TB) f32
    o_ref[...] = jax.nn.sigmoid(logits_t).astype(o_ref.dtype)


def _dimension_semantics():
    """Real cross-TensorCore split of the batch grid on multi-TC chips (v7x);
    plain "parallel" elsewhere (measured no-op, but harmless)."""
    try:
        kind = jax.devices()[0].device_kind.lower()
    except Exception:
        kind = ""
    if "v7" in kind:
        return (pltpu.CORE_PARALLEL,)
    return ("parallel",)


def binary_classifier_forward(x, params, *, block_b=4096):
    """x: (B, input_size) float32. params: dict of w1,b1,w2,b2,w3,b3.

    Returns sigmoid probabilities of shape (B, 1), float32.
    """
    B, D = x.shape
    w1, b1 = params["w1"], params["b1"]
    w2, b2 = params["w2"], params["b2"]
    w3, b3 = params["w3"], params["b3"]
    H1 = w1.shape[1]
    H2 = w2.shape[1]

    # Batch tile: as large as reasonable (amortizes the ~0.35 us per-grid-step
    # cost), rounded DOWN to a multiple of 128 so the (1, TB) output stores
    # stay lane-dense, and clamped to ceil(B/128)*128 for small batches.
    TB = min(int(block_b), pl.cdiv(B, 128) * 128)
    TB = max(128, (TB // 128) * 128)
    G = pl.cdiv(B, TB)

    # No bf16 cast / pad passes over x here: the kernel casts in VMEM and the
    # ragged last tile is handled by Pallas' masked edge DMA. Any garbage rows
    # beyond B only affect discarded output positions (sliced off below).
    xf = x.astype(jnp.float32)

    w1b = w1.astype(jnp.bfloat16)                                # tiny, one-off
    w2b = w2.astype(jnp.bfloat16)
    w3_row = w3.reshape(1, H2).astype(jnp.bfloat16)              # (1, 32)
    b1f = b1.reshape(1, H1).astype(jnp.float32)
    b2f = b2.reshape(1, H2).astype(jnp.float32)
    b3s = b3.reshape(1, 1).astype(jnp.float32)                   # SMEM scalar

    out = pl.pallas_call(
        mlp_kernel,
        out_shape=jax.ShapeDtypeStruct((G, TB), jnp.float32),
        grid=(G,),
        in_specs=[
            pl.BlockSpec((TB, D), lambda i: (i, 0)),             # x tile (pipelined)
            pl.BlockSpec((D, H1), lambda i: (0, 0)),             # w1 (VMEM-resident)
            pl.BlockSpec((1, H1), lambda i: (0, 0)),             # b1
            pl.BlockSpec((H1, H2), lambda i: (0, 0)),            # w2
            pl.BlockSpec((1, H2), lambda i: (0, 0)),             # b2
            pl.BlockSpec((1, H2), lambda i: (0, 0)),             # w3 row
            pl.BlockSpec(memory_space=pltpu.MemorySpace.SMEM),   # b3 scalar
        ],
        out_specs=pl.BlockSpec((1, TB), lambda i: (i, 0)),       # lane-dense row
        compiler_params=pltpu.CompilerParams(
            dimension_semantics=_dimension_semantics(),
            vmem_limit_bytes=32 * 1024 * 1024,                   # headroom > v5e 16 MiB default
        ),
    )(xf, w1b, b1f, w2b, b2f, w3_row, b3s)

    return out.reshape(-1)[:B].reshape(B, 1)


def init_params(input_size, key):
    """Deterministic init mimicking nn.Linear's U(-1/sqrt(fan_in), 1/sqrt(fan_in))."""
    def linear(k, fan_in, fan_out):
        kw, kb = jax.random.split(k)
        bound = 1.0 / jnp.sqrt(fan_in)
        # stored as (in, out) so the kernel computes x @ W + b
        w = jax.random.uniform(kw, (fan_in, fan_out), jnp.float32, -bound, bound)
        b = jax.random.uniform(kb, (1, fan_out), jnp.float32, -bound, bound)
        return w, b

    k1, k2, k3 = jax.random.split(key, 3)
    w1, b1 = linear(k1, input_size, 64)
    w2, b2 = linear(k2, 64, 32)
    w3, b3 = linear(k3, 32, 1)
    return {"w1": w1, "b1": b1, "w2": w2, "b2": b2, "w3": w3, "b3": b3}


if __name__ == "__main__":
    key = jax.random.PRNGKey(0)
    k_x, k_p = jax.random.split(key)

    batch = 8
    input_size = 32
    x = jax.random.normal(k_x, (batch, input_size), jnp.float32)
    params = init_params(input_size, k_p)

    out = binary_classifier_forward(x, params)
    out = jax.block_until_ready(out)
    assert out.shape == (batch, 1)

    # Reference 1: same bf16 quantization as the kernel, f32 accumulation (tight).
    xb = x.astype(jnp.bfloat16)
    w1b = params["w1"].astype(jnp.bfloat16)
    w2b = params["w2"].astype(jnp.bfloat16)
    w3b = params["w3"].astype(jnp.bfloat16)
    h1 = jnp.maximum(
        jnp.dot(xb, w1b, preferred_element_type=jnp.float32) + params["b1"], 0.0)
    h2 = jnp.maximum(
        jnp.dot(h1.astype(jnp.bfloat16), w2b, preferred_element_type=jnp.float32)
        + params["b2"], 0.0)
    ref_bf16 = jax.nn.sigmoid(
        jnp.dot(h2.astype(jnp.bfloat16), w3b, preferred_element_type=jnp.float32)
        + params["b3"])
    assert jnp.allclose(out, ref_bf16, atol=1e-3, rtol=1e-3)

    # Reference 2: original full-f32 module math (loose, bf16-quantization tolerance).
    h1f = jnp.maximum(x @ params["w1"] + params["b1"], 0.0)
    h2f = jnp.maximum(h1f @ params["w2"] + params["b2"], 0.0)
    ref_f32 = jax.nn.sigmoid(h2f @ params["w3"] + params["b3"])
    assert jnp.allclose(out, ref_f32, atol=3e-2)

    print("KERNEL_OK")
</pallas_src>

<mosaic_0001>
module attributes {stable_mosaic.version = 11 : i64} {
  func.func @mlp_kernel(%arg0: i32, %arg1: memref<128x32xf32, #tpu.memory_space<vmem>>, %arg2: memref<32x64xbf16, #tpu.memory_space<vmem>>, %arg3: memref<1x64xf32, #tpu.memory_space<vmem>>, %arg4: memref<64x32xbf16, #tpu.memory_space<vmem>>, %arg5: memref<1x32xf32, #tpu.memory_space<vmem>>, %arg6: memref<1x32xbf16, #tpu.memory_space<vmem>>, %arg7: memref<1x1xf32, #tpu.memory_space<smem>>, %arg8: memref<1x128xf32, #tpu.memory_space<vmem>>) attributes {dimension_semantics = [#tpu.dimension_semantics<parallel>], iteration_bounds = array<i64: 1>, scalar_prefetch = 0 : i64, scratch_operands = 0 : i64, tpu.core_type = #tpu.core_type<tc>, window_params = [{transform_indices = @transform_0, window_bounds = array<i64: 128, 32>}, {pipeline_mode = #tpu.pipeline_mode<synchronous>, transform_indices = @transform_1, window_bounds = array<i64: 32, 64>}, {pipeline_mode = #tpu.pipeline_mode<synchronous>, transform_indices = @transform_2, window_bounds = array<i64: 1, 64>}, {pipeline_mode = #tpu.pipeline_mode<synchronous>, transform_indices = @transform_3, window_bounds = array<i64: 64, 32>}, {pipeline_mode = #tpu.pipeline_mode<synchronous>, transform_indices = @transform_4, window_bounds = array<i64: 1, 32>}, {pipeline_mode = #tpu.pipeline_mode<synchronous>, transform_indices = @transform_5, window_bounds = array<i64: 1, 32>}, {transform_indices = @transform_6, window_bounds = array<i64: 1, 1>}, {transform_indices = @transform_7, window_bounds = array<i64: 1, 128>}]} {
    %c0 = arith.constant 0 : index
    %c0_0 = arith.constant 0 : index
    %0 = vector.load %arg1[%c0, %c0_0] : memref<128x32xf32, #tpu.memory_space<vmem>>, vector<128x32xf32>
    %1 = arith.truncf %0 : vector<128x32xf32> to vector<128x32xbf16>
    %c0_1 = arith.constant 0 : index
    %c0_2 = arith.constant 0 : index
    %2 = vector.load %arg2[%c0_1, %c0_2] : memref<32x64xbf16, #tpu.memory_space<vmem>>, vector<32x64xbf16>
    %cst = arith.constant dense<0.000000e+00> : vector<128x64xf32>
    %3 = tpu.matmul %1, %2, %cst {dimension_numbers = #tpu.dot_dimension_numbers<[1], [0], [0], [1], [0, 0, 1, 1], [], []>} : vector<128x32xbf16>, vector<32x64xbf16>, vector<128x64xf32> -> vector<128x64xf32>
    %c0_3 = arith.constant 0 : index
    %c0_4 = arith.constant 0 : index
    %4 = vector.load %arg3[%c0_3, %c0_4] : memref<1x64xf32, #tpu.memory_space<vmem>>, vector<1x64xf32>
    %5 = vector.broadcast %4 : vector<1x64xf32> to vector<128x64xf32>
    %6 = arith.addf %3, %5 : vector<128x64xf32>
    %cst_5 = arith.constant 0.000000e+00 : f32
    %7 = vector.broadcast %cst_5 : f32 to vector<128x64xf32>
    %8 = arith.maximumf %6, %7 : vector<128x64xf32>
    %9 = arith.truncf %8 : vector<128x64xf32> to vector<128x64xbf16>
    %c0_6 = arith.constant 0 : index
    %c0_7 = arith.constant 0 : index
    %10 = vector.load %arg4[%c0_6, %c0_7] : memref<64x32xbf16, #tpu.memory_space<vmem>>, vector<64x32xbf16>
    %cst_8 = arith.constant dense<0.000000e+00> : vector<128x32xf32>
    %11 = tpu.matmul %9, %10, %cst_8 {dimension_numbers = #tpu.dot_dimension_numbers<[1], [0], [0], [1], [0, 0, 1, 1], [], []>} : vector<128x64xbf16>, vector<64x32xbf16>, vector<128x32xf32> -> vector<128x32xf32>
    %c0_9 = arith.constant 0 : index
    %c0_10 = arith.constant 0 : index
    %12 = vector.load %arg5[%c0_9, %c0_10] : memref<1x32xf32, #tpu.memory_space<vmem>>, vector<1x32xf32>
    %13 = vector.broadcast %12 : vector<1x32xf32> to vector<128x32xf32>
    %14 = arith.addf %11, %13 : vector<128x32xf32>
    %cst_11 = arith.constant 0.000000e+00 : f32
    %15 = vector.broadcast %cst_11 : f32 to vector<128x32xf32>
    %16 = arith.maximumf %14, %15 : vector<128x32xf32>
    %c0_12 = arith.constant 0 : index
    %c0_13 = arith.constant 0 : index
    %17 = vector.load %arg6[%c0_12, %c0_13] : memref<1x32xbf16, #tpu.memory_space<vmem>>, vector<1x32xbf16>
    %18 = arith.truncf %16 : vector<128x32xf32> to vector<128x32xbf16>
    %cst_14 = arith.constant dense<0.000000e+00> : vector<1x128xf32>
    %19 = tpu.matmul %17, %18, %cst_14 {dimension_numbers = #tpu.dot_dimension_numbers<[1], [1], [0], [0], [0, 0, 1, 0], [], []>} : vector<1x32xbf16>, vector<128x32xbf16>, vector<1x128xf32> -> vector<1x128xf32>
    %c0_15 = arith.constant 0 : index
    %c0_16 = arith.constant 0 : index
    %20 = memref.load %arg7[%c0_15, %c0_16] : memref<1x1xf32, #tpu.memory_space<smem>>
    %21 = vector.broadcast %20 : f32 to vector<1x128xf32>
    %22 = arith.addf %19, %21 : vector<1x128xf32>
    %23 = arith.negf %22 : vector<1x128xf32>
    %24 = math.exp %23 : vector<1x128xf32>
    %cst_17 = arith.constant 1.000000e+00 : f32
    %25 = vector.broadcast %cst_17 : f32 to vector<1x128xf32>
    %26 = arith.addf %25, %24 : vector<1x128xf32>
    %27 = arith.divf %25, %26 : vector<1x128xf32>
    %c0_18 = arith.constant 0 : index
    %c0_19 = arith.constant 0 : index
    %28 = vector.load %arg8[%c0_18, %c0_19] : memref<1x128xf32, #tpu.memory_space<vmem>>, vector<1x128xf32>
    tpu.vector_store %arg8[%c0_18, %c0_19], %27 {strides = array<i32>} : memref<1x128xf32, #tpu.memory_space<vmem>>, vector<1x128xf32>,
    return
  }
  func.func @transform_0(%arg0: i32) -> (i32, i32) {
    %c0_i32 = arith.constant 0 : i32
    %c0_i32_0 = arith.constant 0 : i32
    return %arg0, %c0_i32 : i32, i32
  }
  func.func @transform_1(%arg0: i32) -> (i32, i32) {
    %c0_i32 = arith.constant 0 : i32
    %c0_i32_0 = arith.constant 0 : i32
    %c0_i32_1 = arith.constant 0 : i32
    return %c0_i32, %c0_i32_0 : i32, i32
  }
  func.func @transform_2(%arg0: i32) -> (i32, i32) {
    %c0_i32 = arith.constant 0 : i32
    %c0_i32_0 = arith.constant 0 : i32
    %c0_i32_1 = arith.constant 0 : i32
    return %c0_i32, %c0_i32_0 : i32, i32
  }
  func.func @transform_3(%arg0: i32) -> (i32, i32) {
    %c0_i32 = arith.constant 0 : i32
    %c0_i32_0 = arith.constant 0 : i32
    %c0_i32_1 = arith.constant 0 : i32
    return %c0_i32, %c0_i32_0 : i32, i32
  }
  func.func @transform_4(%arg0: i32) -> (i32, i32) {
    %c0_i32 = arith.constant 0 : i32
    %c0_i32_0 = arith.constant 0 : i32
    %c0_i32_1 = arith.constant 0 : i32
    return %c0_i32, %c0_i32_0 : i32, i32
  }
  func.func @transform_5(%arg0: i32) -> (i32, i32) {
    %c0_i32 = arith.constant 0 : i32
    %c0_i32_0 = arith.constant 0 : i32
    %c0_i32_1 = arith.constant 0 : i32
    return %c0_i32, %c0_i32_0 : i32, i32
  }
  func.func @transform_6(%arg0: i32) -> (i32, i32) {
    %c0_i32 = arith.constant 0 : i32
    %c0_i32_0 = arith.constant 0 : i32
    %c0_i32_1 = arith.constant 0 : i32
    return %c0_i32, %c0_i32_0 : i32, i32
  }
  func.func @transform_7(%arg0: i32) -> (i32, i32) {
    %c0_i32 = arith.constant 0 : i32
    %c0_i32_0 = arith.constant 0 : i32
    return %arg0, %c0_i32 : i32, i32
  }
}

</mosaic_0001>

<bundles_post_ra>
// kernel: tpu_custom_call.1
= control target key start
LH: loop header
LB: loop body
LE: loop exit
PB: predicated region body
PF: predicated region fallthrough
CT: control target
= control target key end

     0   :  { %vm76_vm0 = vcmask 261120   ;;  %s823_s0 = inlined_call_operand.vmem [shape: f32[8,32], index: 0, kind: input, shape index: {}]   ;;  %s824_s1 = inlined_call_operand.vmem [shape: bf16[32,64], index: 1, kind: input, shape index: {}]   ;;  %s825_s2 = inlined_call_operand.vmem [shape: f32[1,64], index: 2, kind: input, shape index: {}]   ;;  %s826_s3 = inlined_call_operand.vmem [shape: bf16[64,32], index: 3, kind: input, shape index: {}]   ;;  %s827_s4 = inlined_call_operand.vmem [shape: f32[1,32], index: 4, kind: input, shape index: {}]   ;;  %s828_s5 = inlined_call_operand.vmem [shape: bf16[1,32], index: 5, kind: input, shape index: {}]   ;;  %s829_s6 = inlined_call_operand.<no memory space> [shape: f32[1,1], index: 6, kind: input, shape index: {}]   ;;  %s830_s7 = inlined_call_operand.hbm [shape: f32[1,128], index: 7, kind: output, shape index: {}]  }
   0x1   :  { %v622_v0 = vld [vmem:[%s824_s1] sm:$0xff]   ;;  %v623_v1 = vld [vmem:[%s824_s1 + $0x8] sm:$0xff]   ;;  %v31_v5 = vld [vmem:[%s823_s0 + $0x10] sm:$0xff] }
   0x2   :  { %555 = vmatprep.subr.bf16.mxu1 %v622_v0  ;;  %v29_v2 = vld [vmem:[%s823_s0] sm:$0xff]  ;;  %v30_v3 = vld [vmem:[%s823_s0 + $0x8] sm:$0xff]  ;;  %v32_v6 = vld [vmem:[%s823_s0 + $0x18] sm:$0xff] }
   0x3   :  { %556 = vmatpush3.bf16.msra.mxu1 %v622_v0  ;;  %v45_v4 = vpack.c.bf16 %v30_v3, %v29_v2  ;;  %v33_v7 = vld [vmem:[%s823_s0 + $0x20] sm:$0xff]  ;;  %v34_v8 = vld [vmem:[%s823_s0 + $0x28] sm:$0xff]  ;;  %v46_v9 = vpack.c.bf16 %v32_v6, %v31_v5  ;;  %v35_v13 = vld [vmem:[%s823_s0 + $0x30] sm:$0xff] }
   0x4   :  { %557 = vmatprep.subr.bf16.mxu1 %v623_v1  ;;  %v47_v10 = vpack.c.bf16 %v34_v8, %v33_v7  ;;  %v624_v11 = vld [vmem:[%s826_s3] sm:$0xff]   ;;  %v625_v12 = vld [vmem:[%s826_s3 + $0x8] sm:$0xff]   ;;  %v36_v14 = vld [vmem:[%s823_s0 + $0x38] sm:$0xff] }
   0x5   :  { %559 = vmatprep.mubr.msk.bf16.mxu1 %vm76_vm0, %v45_v4 }
   0x7   :  { %558 = vmatpush3.bf16.msra.mxu1 %v623_v1 }
   0x8   :  { %575 = vmatprep.subr.bf16.mxu1 %v624_v11 }
   0xa   :  { %560 = vmatmul.mubr.msk.bf16.vlgmr.msra.gmra.mrb[0].mxu1 %vm76_vm0, %v46_v9 }
   0xb   :  { %563 = vmatprep.mubr.msk.bf16.mxu1 %vm76_vm0, %v47_v10  ;;  %576 = vmatpush3.bf16.msra.mxu1 %v624_v11 }
   0xc   :  { %13 = vsyncpa [#allocation4], 0  ;;  %v37_v15 = vld [vmem:[%s823_s0 + $0x40] sm:$0xff]  ;;  %v38_v16 = vld [vmem:[%s823_s0 + $0x48] sm:$0xff]  ;;  %577 = vmatprep.subr.bf16.mxu1 %v625_v12  ;;  %v48_v18 = vpack.c.bf16 %v36_v14, %v35_v13  ;;  %vm261_vm1 = vcmask 523264   ;;  %vm657_vm2 = vmmov 0  }
   0xd   :  { %v626_v17 = vld [vmem:[%s826_s3 + $0x10] sm:$0xff]   ;;  %v49_v19 = vpack.c.bf16 %v38_v16, %v37_v15  ;;  %v40_v21 = vld [vmem:[%s823_s0 + $0x58] sm:$0xff]  ;;  %v41_v22 = vld [vmem:[%s823_s0 + $0x60] sm:$0xff]  ;;  %s658_s24 = smov [#allocation3]  }
   0xe   :  { %v39_v20 = vld [vmem:[%s823_s0 + $0x50] sm:$0xff]  ;;  %v42_v23 = vld [vmem:[%s823_s0 + $0x68] sm:$0xff]  ;;  %v44_v27 = vld [vmem:[%s823_s0 + $0x78] sm:$0xff]  ;;  %s490_s25 = sshll.u32 %s658_s24, 4  ;;  %s491_s25 = int_to_ptr.vmem [resolvable:$true] %s490_s25 }
   0xf   :  { %578 = vmatpush3.bf16.msra.mxu1 %v625_v12  ;;  %v50_v24 = vpack.c.bf16 %v40_v21, %v39_v20  ;;  %v51_v25 = vpack.c.bf16 %v42_v23, %v41_v22  ;;  %v43_v26 = vld [vmem:[%s823_s0 + $0x70] sm:$0xff]  ;;  %v627_v29 = vld [vmem:[%s826_s3 + $0x18] sm:$0xff]   ;;  %v498_v30 = vld [vmem:[%s825_s2] ss:$0 sm:$0xff]  ;;  %v656_v23 = vmov 0.0   ;;  %s636_s26 = scalar_lea.vmem %s491_s25, 32  ;;  %p637_p1 = scmp.lt.s32.totalorder %s491_s25, %s491_s25 }
  0x10   :  { %579 = vmatprep.subr.bf16.mxu1 %v626_v17  ;;  %v52_v28 = vpack.c.bf16 %v44_v27, %v43_v26  ;;  %599 = vmatprep.subr.bf16.mxu0 %v656_v23 }
  0x11   :  { %615 = vmatprep.mubr.msk.bf16.mxu0 %vm657_vm2, %v656_v23 }
  0x12   :  { %564 = vmatmul.mubr.msk.bf16.gmra.mrb[4].mxu1 %vm76_vm0, %v48_v18 }
  0x13   :  { %567 = vmatprep.mubr.msk.bf16.mxu1 %vm76_vm0, %v49_v19  ;;  %580 = vmatpush3.bf16.msra.mxu1 %v626_v17 }
  0x14   :  { %581 = vmatprep.subr.bf16.mxu1 %v627_v29 }
  0x17   :  { %582 = vmatpush3.bf16.msra.mxu1 %v627_v29 }
  0x1a   :  { %568 = vmatmul.mubr.msk.bf16.gmra.mrb[8].mxu1 %vm76_vm0, %v50_v24  ;;  %v509_v24 = vld [vmem:[%s827_s4] ss:$0 sm:$0xff] }
  0x1b   :  { %571 = vmatprep.mubr.msk.bf16.mxu1 %vm76_vm0, %v51_v25 }
  0x22   :  { %572 = vmatmul.mubr.msk.bf16.gmra.mrb[12].mxu1 %vm76_vm0, %v52_v28 }
  0xdd   :  { %v561_v31 = vpop.f32.mrb[0].mxu1 }
  0xde   :  { %v144_v32 = vadd.f32 %v561_v31, %v498_v30  ;;  %v135_v33 = vpop.f32.mrb[1].mxu1 }
  0xdf   :  { %v136_v34 = vadd.f32 %v498_v30, %v135_v33  ;;  %v562_v35 = vpop.f32.mrb[2].mxu1 }
  0xe0   :  { %v147_v36 = vadd.f32 %v562_v35, %v498_v30  ;;  %v138_v37 = vpop.f32.mrb[3].mxu1  ;;  %v200_v39 = vmax.f32 %v144_v32, 0.0 }
  0xe1   :  { %v139_v38 = vadd.f32 %v498_v30, %v138_v37  ;;  %v198_v41 = vmax.f32 %v136_v34, 0.0 }
  0xe2   :  { %v201_v40 = vmax.f32 %v147_v36, 0.0 }
  0xe3   :  { %v199_v42 = vmax.f32 %v139_v38, 0.0 }
  0xe4   :  { %v215_v43 = vpack.c.bf16 %v201_v40, %v200_v39 }
  0xe5   :  { %v214_v44 = vpack.c.bf16 %v199_v42, %v198_v41  ;;  %v565_v45 = vpop.f32.mrb[4].mxu1 }
  0xe6   :  { %v160_v46 = vadd.f32 %v565_v45, %v498_v30  ;;  %v151_v47 = vpop.f32.mrb[5].mxu1 }
  0xe7   :  { %v152_v48 = vadd.f32 %v498_v30, %v151_v47  ;;  %583 = vmatprep.mubr.msk.bf16.mxu1 %vm261_vm1, %v214_v44  ;;  %v566_v49 = vpop.f32.mrb[6].mxu1 }
  0xe8   :  { %v204_v50 = vmax.f32 %v160_v46, 0.0  ;;  %v163_v51 = vadd.f32 %v566_v49, %v498_v30  ;;  %584 = vmatmul.mubr.msk.bf16.vlgmr.msra.gmra.mrb[16].mxu1 %vm261_vm1, %v215_v43  ;;  %v154_v52 = vpop.f32.mrb[7].mxu1 }
  0xe9   :  { %v202_v53 = vmax.f32 %v152_v48, 0.0  ;;  %v155_v54 = vadd.f32 %v498_v30, %v154_v52 }
  0xea   :  { %v205_v55 = vmax.f32 %v163_v51, 0.0 }
  0xeb   :  { %v203_v56 = vmax.f32 %v155_v54, 0.0 }
  0xec   :  { %v217_v57 = vpack.c.bf16 %v205_v55, %v204_v50 }
  0xed   :  { %v216_v58 = vpack.c.bf16 %v203_v56, %v202_v53  ;;  %v569_v59 = vpop.f32.mrb[8].mxu1 }
  0xee   :  { %v176_v60 = vadd.f32 %v569_v59, %v498_v30  ;;  %v167_v61 = vpop.f32.mrb[9].mxu1 }
  0xef   :  { %587 = vmatprep.mubr.msk.bf16.mxu1 %vm261_vm1, %v216_v58  ;;  %v168_v62 = vadd.f32 %v498_v30, %v167_v61  ;;  %v570_v63 = vpop.f32.mrb[10].mxu1 }
  0xf0   :  { %588 = vmatmul.mubr.msk.bf16.gmra.mrb[20].mxu1 %vm261_vm1, %v217_v57  ;;  %v208_v0 = vmax.f32 %v176_v60, 0.0  ;;  %v179_v1 = vadd.f32 %v570_v63, %v498_v30  ;;  %v170_v2 = vpop.f32.mrb[11].mxu1 }
  0xf1   :  { %v206_v3 = vmax.f32 %v168_v62, 0.0  ;;  %v171_v4 = vadd.f32 %v498_v30, %v170_v2 }
  0xf2   :  { %v209_v5 = vmax.f32 %v179_v1, 0.0 }
  0xf3   :  { %v207_v6 = vmax.f32 %v171_v4, 0.0 }
  0xf4   :  { %v219_v7 = vpack.c.bf16 %v209_v5, %v208_v0 }
  0xf5   :  { %v218_v8 = vpack.c.bf16 %v207_v6, %v206_v3  ;;  %v573_v9 = vpop.f32.mrb[12].mxu1 }
  0xf6   :  { %v192_v10 = vadd.f32 %v573_v9, %v498_v30  ;;  %v183_v11 = vpop.f32.mrb[13].mxu1 }
  0xf7   :  { %591 = vmatprep.mubr.msk.bf16.mxu1 %vm261_vm1, %v218_v8  ;;  %v184_v12 = vadd.f32 %v498_v30, %v183_v11  ;;  %v574_v13 = vpop.f32.mrb[14].mxu1 }
  0xf8   :  { %592 = vmatmul.mubr.msk.bf16.gmra.mrb[24].mxu1 %vm261_vm1, %v219_v7  ;;  %v212_v14 = vmax.f32 %v192_v10, 0.0  ;;  %v195_v15 = vadd.f32 %v574_v13, %v498_v30  ;;  %v186_v16 = vpop.f32.mrb[15].mxu1 }
  0xf9   :  { %v210_v17 = vmax.f32 %v184_v12, 0.0  ;;  %v187_v18 = vadd.f32 %v498_v30, %v186_v16 }
  0xfa   :  { %v213_v19 = vmax.f32 %v195_v15, 0.0 }
  0xfb   :  { %v211_v20 = vmax.f32 %v187_v18, 0.0 }
  0xfc   :  { %v221_v21 = vpack.c.bf16 %v213_v19, %v212_v14 }
  0xfd   :  { %v220_v22 = vpack.c.bf16 %v211_v20, %v210_v17 }
  0xff   :  { %595 = vmatprep.mubr.msk.bf16.mxu1 %vm261_vm1, %v220_v22 }
 0x100   :  { %596 = vmatmul.mubr.msk.bf16.gmra.mrb[28].mxu1 %vm261_vm1, %v221_v21 }
 0x1bb   :  { %v585_v25 = vpop.f32.mrb[16].mxu1 }
 0x1bc   :  { %v329_v26 = vadd.f32 %v585_v25, %v509_v24  ;;  %v320_v27 = vpop.f32.mrb[17].mxu1 }
 0x1bd   :  { %v321_v28 = vadd.f32 %v509_v24, %v320_v27  ;;  %v586_v29 = vpop.f32.mrb[18].mxu1  ;;  %v409_v27 = vstv %s829_s6 }
 0x1be   :  { %v332_v30 = vadd.f32 %v586_v29, %v509_v24  ;;  %v323_v31 = vpop.f32.mrb[19].mxu1  ;;  %v385_v33 = vmax.f32 %v329_v26, 0.0  ;;  %v399_v26 = vld [vmem:[%s828_s5] sm:$0x1]  ;;  %s632_s5 = scalar_lea.vmem %s491_s25, 16 }
 0x1bf   :  { %v324_v32 = vadd.f32 %v509_v24, %v323_v31  ;;  %v383_v35 = vmax.f32 %v321_v28, 0.0  ;;  %p633_p0 = scmp.ne.s32.totalorder %s491_s25, %s632_s5  ;;  %p638_p2 = scmp.lt.s32.totalorder %s636_s26, %s632_s5 }
 0x1c0   :  { %v386_v34 = vmax.f32 %v332_v30, 0.0 }
 0x1c1   :  { %v384_v36 = vmax.f32 %v324_v32, 0.0  ;;  %p639_p3 = por %p638_p2, %p637_p1 }
 0x1c2   :  { %v401_v37 = vpack.c.bf16 %v386_v34, %v385_v33 }
 0x1c3   :  { %v589_v38 = vpop.f32.mrb[20].mxu1  ;;  %v400_v39 = vpack.c.bf16 %v384_v36, %v383_v35  ;;  %p640_p4 = pnand %p639_p3, %p633_p0 }
 0x1c4   :  { %v345_v40 = vadd.f32 %v589_v38, %v509_v24  ;;  %v336_v41 = vpop.f32.mrb[21].mxu1  ;;  %v417_v57 = vsel %vm76_vm0, %v401_v37, 0 }
 0x1c5   :  { %v337_v42 = vadd.f32 %v509_v24, %v336_v41  ;;  %v590_v43 = vpop.f32.mrb[22].mxu1  ;;  %v414_v44 = vsel %vm76_vm0, %v400_v39, 0 }
 0x1c6   :  { %v389_v45 = vmax.f32 %v345_v40, 0.0  ;;  %v348_v46 = vadd.f32 %v590_v43, %v509_v24  ;;  %600 = vmatpush3.bf16.xpose.msra.mxu0 %v414_v44  ;;  %v339_v47 = vpop.f32.mrb[23].mxu1 }
 0x1c7   :  { %v387_v48 = vmax.f32 %v337_v42, 0.0  ;;  %v340_v49 = vadd.f32 %v509_v24, %v339_v47  ;;  %601 = vmatprep.subr.bf16.mxu0 %v656_v23 }
 0x1c8   :  { %v390_v50 = vmax.f32 %v348_v46, 0.0 }
 0x1c9   :  { %v388_v51 = vmax.f32 %v340_v49, 0.0 }
 0x1ca   :  { %v403_v52 = vpack.c.bf16 %v390_v50, %v389_v45 }
 0x1cb   :  { %v402_v53 = vpack.c.bf16 %v388_v51, %v387_v48  ;;  %v593_v54 = vpop.f32.mrb[24].mxu1 }
 0x1cc   :  { %v361_v55 = vadd.f32 %v593_v54, %v509_v24  ;;  %v352_v56 = vpop.f32.mrb[25].mxu1  ;;  %v423_v20 = vsel %vm76_vm0, %v403_v52, 0 }
 0x1cd   :  { %v353_v58 = vadd.f32 %v509_v24, %v352_v56  ;;  %v594_v59 = vpop.f32.mrb[26].mxu1  ;;  %v420_v8 = vsel %vm76_vm0, %v402_v53, 0 }
 0x1ce   :  { %602 = vmatpush3.bf16.xpose.msra.mxu0 %v417_v57  ;;  %v393_v60 = vmax.f32 %v361_v55, 0.0  ;;  %v364_v61 = vadd.f32 %v594_v59, %v509_v24  ;;  %v355_v62 = vpop.f32.mrb[27].mxu1 }
 0x1cf   :  { %v391_v63 = vmax.f32 %v353_v58, 0.0  ;;  %603 = vmatprep.subr.bf16.mxu0 %v656_v23  ;;  %v356_v0 = vadd.f32 %v509_v24, %v355_v62 }
 0x1d0   :  { %v394_v1 = vmax.f32 %v364_v61, 0.0 }
 0x1d1   :  { %v392_v2 = vmax.f32 %v356_v0, 0.0 }
 0x1d2   :  { %v405_v3 = vpack.c.bf16 %v394_v1, %v393_v60 }
 0x1d3   :  { %v404_v4 = vpack.c.bf16 %v392_v2, %v391_v63  ;;  %v597_v5 = vpop.f32.mrb[28].mxu1 }
 0x1d4   :  { %v377_v6 = vadd.f32 %v597_v5, %v509_v24  ;;  %v368_v7 = vpop.f32.mrb[29].mxu1  ;;  %v429_v22 = vsel %vm76_vm0, %v405_v3, 0 }
 0x1d5   :  { %v369_v9 = vadd.f32 %v509_v24, %v368_v7  ;;  %v598_v10 = vpop.f32.mrb[30].mxu1  ;;  %v426_v21 = vsel %vm76_vm0, %v404_v4, 0 }
 0x1d6   :  { %604 = vmatpush3.bf16.xpose.msra.mxu0 %v420_v8  ;;  %v397_v11 = vmax.f32 %v377_v6, 0.0  ;;  %v380_v12 = vadd.f32 %v598_v10, %v509_v24  ;;  %v371_v13 = vpop.f32.mrb[31].mxu1 }
 0x1d7   :  { %605 = vmatprep.subr.bf16.mxu0 %v656_v23  ;;  %v395_v14 = vmax.f32 %v369_v9, 0.0  ;;  %v372_v15 = vadd.f32 %v509_v24, %v371_v13 }
 0x1d8   :  { %v398_v16 = vmax.f32 %v380_v12, 0.0 }
 0x1d9   :  { %v396_v17 = vmax.f32 %v372_v15, 0.0 }
 0x1da   :  { %v407_v18 = vpack.c.bf16 %v398_v16, %v397_v11 }
 0x1db   :  { %v406_v19 = vpack.c.bf16 %v396_v17, %v395_v14 }
 0x1dc   :  { %v435_v25 = vsel %vm76_vm0, %v407_v18, 0 }
 0x1dd   :  { %v432_v24 = vsel %vm76_vm0, %v406_v19, 0 }
 0x1de   :  { %606 = vmatpush3.bf16.xpose.msra.mxu0 %v423_v20 }
 0x1df   :  { %607 = vmatprep.subr.bf16.mxu0 %v656_v23 }
 0x1e6   :  { %608 = vmatpush3.bf16.xpose.msra.mxu0 %v426_v21 }
 0x1e7   :  { %609 = vmatprep.subr.bf16.mxu0 %v656_v23 }
 0x1ee   :  { %610 = vmatpush3.bf16.xpose.msra.mxu0 %v429_v22 }
 0x1ef   :  { %611 = vmatprep.subr.bf16.mxu0 %v656_v23 }
 0x1f6   :  { %612 = vmatpush3.bf16.xpose.msra.mxu0 %v432_v24 }
 0x1f7   :  { %613 = vmatprep.subr.bf16.mxu0 %v656_v23 }
 0x1fe   :  { %614 = vmatpush3.bf16.xpose.msra.mxu0 %v435_v25 }
 0x205   :  { %616 = vmatmul.mubr.msk.bf16.vlgmr.msra.gmra.mrb[0].mxu0 %vm76_vm0, %v399_v26 }
 0x2d8   :  { %v471_v28 = vpop.f32.mrb[0].mxu0 }
 0x2d9   :  { %v472_v29 = vadd.f32 %v471_v28, %v409_v27  ;;  %v617_v30 = vpop.f32.mrb[1].mxu0 }
 0x2da   :  { %v474_v31 = vpop.f32.mrb[2].mxu0 }
 0x2db   :  { %v523_v32 = vmul.f32 -1.442695, %v472_v29  ;;  %v618_v33 = vpop.f32.mrb[3].mxu0 }
 0x2dd   :  { %628 = vpow2.f32 %v523_v32 }
 0x2e7   :  { %v629_v23 = vpop.eup %628 }
 0x2e8   :  { %v480_v34 = vadd.f32 1.0, %v629_v23 }
 0x2ea   :  { %630 = vrcp.f32 %v480_v34 }
 0x2f4   :  { %v631_v35 = vpop.eup %630 }
 0x2f5   :  { %483 = vst [vmem:[#allocation3] sm:$0x1] %v631_v35 }
 0x2f6   :  { %643 = shalt.err (!%p640_p4)
}
 0x2f7   :  { %s644_s28 = scalar_lea.hbm %s830_s7, 16 }
 0x2f8   :  { %p645_p5 = scmp.ne.s32.totalorder %s830_s7, %s644_s28  ;;  %p648_p6 = scmp.lt.u32.totalorder %s644_s28, %s830_s7 }
 0x2fa   :  { %p650_p7 = pnand %p648_p6, %p645_p5 }
 0x2fc   :  { %653 = shalt.err (!%p650_p7)
}
 0x2fd   :  { %493 = dma.vmem_to_hbm [thread:$0]  %s491_s25, 16, %s830_s7, [#allocation4]  }
 0x2fe   :  { %654 = dma.done.wait [#allocation4], 16  }
 0x2ff   :  { %655 = vsyncadd [#allocation4], 4294967280 }
 0x300   :  { %497 = vsyncpa [#allocation4], 1 }

</bundles_post_ra>
